<compile_context>
chip_gen: v7x
topology: tpu7x:2x2x1
jax: 0.10.0
libtpu: 0.0.40
codegen_flags: <defaults>
</compile_context>

<pallas_src>
import functools

import jax
import jax.numpy as jnp
from jax.experimental import pallas as pl
from jax.experimental.pallas import tpu as pltpu

_LANE = 128
_SOFTPLUS_THRESHOLD = 20.0  # matches torch.nn.functional.softplus default


def _mish_kernel(x_ref, o_ref):
    xf = x_ref[...].astype(jnp.float32)
    # tanh(softplus(x)) == n / (n + 2), n = e*(e+2), e = exp(x); clamp at 20
    # (torch softplus threshold) keeps n finite and the factor exactly 1.0.
    e = jnp.exp(jnp.minimum(xf, _SOFTPLUS_THRESHOLD))
    n = e * (e + 2.0)
    # Approximate EUP reciprocal instead of a VPU divide: a few ULPs of error,
    # but keeps the VALU slot free so the kernel stays memory-bound on v7x.
    y = xf * (n * pl.reciprocal(n + 2.0, approx=True))
    o_ref[...] = y.astype(o_ref.dtype)


def _mish_jnp(x):
    # Plain-jnp fallback, used only for arrays smaller than one packed tile.
    xf = x.astype(jnp.float32)
    e = jnp.exp(jnp.minimum(xf, _SOFTPLUS_THRESHOLD))
    n = e * (e + 2.0)
    return (xf * (n / (n + 2.0))).astype(x.dtype)


@functools.lru_cache(maxsize=None)
def _chip_params():
    """Returns (tile_bytes, num_tensorcores) for the local TPU generation."""
    try:
        kind = jax.devices()[0].device_kind.lower()
    except Exception:  # pragma: no cover - defensive
        kind = ""
    if "v7" in kind:
        # 32 MiB scoped-VMEM default (64 MiB physical), 2 TCs/chip.
        # 6 MiB blocks -> in+out double-buffered = 24 MiB, ~6% per-step tax.
        return 6 * 1024 * 1024, 2
    if "v6" in kind:
        # 32 MiB scoped default (128 MiB physical), 1 TC.
        return 6 * 1024 * 1024, 1
    # v5e / unknown: 16 MiB scoped default -> 2 MiB blocks (8 MiB buffers).
    return 2 * 1024 * 1024, 1


def mish(x: jax.Array, *, tile_bytes: int | None = None) -> jax.Array:
    """Elementwise Mish. Accepts any shape / floating dtype."""
    orig_shape = x.shape
    dtype = x.dtype
    n = x.size
    if n == 0:
        return x

    default_tile, num_tc = _chip_params()
    if tile_bytes is None:
        tile_bytes = default_tile

    itemsize = jnp.dtype(dtype).itemsize
    # Native packed sublane tile: 8 rows (4-byte), 16 (2-byte), 32 (1-byte).
    row_unit = max(8, 32 // itemsize)

    # Below one packed tile a kernel launch isn't worth it.
    if n < row_unit * _LANE:
        return _mish_jnp(x)

    flat = x.reshape(-1)
    pad = (-n) % _LANE
    if pad:
        # One tiny up-front pad (< 128 elements) so the entire array streams
        # through a single kernel call; no concatenate / second output pass.
        flat = jnp.pad(flat, (0, pad))
    rows = flat.size // _LANE
    x2d = flat.reshape(rows, _LANE)

    # Block rows: ~tile_bytes per buffer, multiple of the packed row unit.
    tr = (tile_bytes // (_LANE * itemsize)) // row_unit * row_unit
    tr = max(row_unit, tr)
    if num_tc >= 2:
        # Keep >= 4 grid steps per core so each TC still double-buffers its
        # DMA when the grid is sharded across cores. (Skip on 1-TC chips:
        # extra steps there are pure per-step overhead.)
        target_steps = 4 * num_tc
        if rows >= target_steps * row_unit:
            cap = -(-rows // target_steps)            # ceil(rows / steps)
            cap = -(-cap // row_unit) * row_unit      # round up to row_unit
            tr = min(tr, cap)
    tr = min(tr, rows)  # either a multiple of row_unit, or the full array dim
    grid = (pl.cdiv(rows, tr),)  # ragged last block is masked by Pallas

    out2d = pl.pallas_call(
        _mish_kernel,
        out_shape=jax.ShapeDtypeStruct((rows, _LANE), dtype),
        grid_spec=pltpu.PrefetchScalarGridSpec(
            num_scalar_prefetch=0,
            grid=grid,
            in_specs=[pl.BlockSpec((tr, _LANE), lambda i: (i, 0))],
            out_specs=pl.BlockSpec((tr, _LANE), lambda i: (i, 0)),
        ),
        compiler_params=pltpu.CompilerParams(
            dimension_semantics=("parallel",),
        ),
        cost_estimate=pl.CostEstimate(
            flops=6 * rows * _LANE,
            transcendentals=rows * _LANE,
            bytes_accessed=2 * rows * _LANE * itemsize,
        ),
    )(x2d)

    out_flat = out2d.reshape(-1)
    if pad:
        out_flat = out_flat[:n]
    return out_flat.reshape(orig_shape)


def _mish_ref(x):
    xf = x.astype(jnp.float32)
    sp = jnp.logaddexp(xf, 0.0)
    return (xf * jnp.tanh(sp)).astype(x.dtype)


if __name__ == "__main__":
    # NCHW input matching the PyTorch module's typical use.
    x = jax.random.normal(jax.random.PRNGKey(0), (2, 4, 16, 16), dtype=jnp.float32) * 3.0
    y = mish(x)
    jax.block_until_ready(y)
    assert y.shape == x.shape and y.dtype == x.dtype
    # Tolerance loosened slightly for the approx-reciprocal path; still tight
    # enough to catch any formulation bug.
    assert jnp.allclose(y, _mish_ref(x), atol=5e-3, rtol=5e-3)

    # Unaligned total size -> exercises the pad-once + prefix-slice path.
    x2 = jax.random.normal(jax.random.PRNGKey(1), (3, 5, 7, 11), dtype=jnp.float32) * 3.0
    y2 = mish(x2)
    jax.block_until_ready(y2)
    assert jnp.allclose(y2, _mish_ref(x2), atol=5e-3, rtol=5e-3)

    # Small explicit tile -> multi-step grid with a masked ragged last block.
    x3 = jax.random.normal(jax.random.PRNGKey(2), (3, 1024), dtype=jnp.float32) * 3.0
    y3 = mish(x3, tile_bytes=8 * 1024)
    jax.block_until_ready(y3)
    assert jnp.allclose(y3, _mish_ref(x3), atol=5e-3, rtol=5e-3)

    print("KERNEL_OK")
</pallas_src>

<mosaic_0001>
module attributes {stable_mosaic.version = 11 : i64} {
  func.func @_mish_kernel(%arg0: i32, %arg1: memref<16x128xf32, #tpu.memory_space<vmem>>, %arg2: memref<16x128xf32, #tpu.memory_space<vmem>>) attributes {dimension_semantics = [#tpu.dimension_semantics<parallel>], iteration_bounds = array<i64: 1>, scalar_prefetch = 0 : i64, scratch_operands = 0 : i64, tpu.core_type = #tpu.core_type<tc>, window_params = [{transform_indices = @transform_0, window_bounds = array<i64: 16, 128>}, {transform_indices = @transform_1, window_bounds = array<i64: 16, 128>}]} {
    %c0 = arith.constant 0 : index
    %c0_0 = arith.constant 0 : index
    %0 = vector.load %arg1[%c0, %c0_0] : memref<16x128xf32, #tpu.memory_space<vmem>>, vector<16x128xf32>
    %cst = arith.constant 2.000000e+01 : f32
    %1 = vector.broadcast %cst : f32 to vector<16x128xf32>
    %2 = arith.minimumf %0, %1 : vector<16x128xf32>
    %3 = math.exp %2 : vector<16x128xf32>
    %cst_1 = arith.constant 2.000000e+00 : f32
    %4 = vector.broadcast %cst_1 : f32 to vector<16x128xf32>
    %5 = arith.addf %3, %4 : vector<16x128xf32>
    %6 = arith.mulf %3, %5 : vector<16x128xf32>
    %cst_2 = arith.constant 2.000000e+00 : f32
    %7 = vector.broadcast %cst_2 : f32 to vector<16x128xf32>
    %8 = arith.addf %6, %7 : vector<16x128xf32>
    %9 = tpu.reciprocal %8 {approx = true} : vector<16x128xf32> -> vector<16x128xf32>
    %10 = arith.mulf %6, %9 : vector<16x128xf32>
    %11 = arith.mulf %0, %10 : vector<16x128xf32>
    %c0_3 = arith.constant 0 : index
    %c0_4 = arith.constant 0 : index
    %12 = vector.load %arg2[%c0_3, %c0_4] : memref<16x128xf32, #tpu.memory_space<vmem>>, vector<16x128xf32>
    tpu.vector_store %arg2[%c0_3, %c0_4], %11 {strides = array<i32>} : memref<16x128xf32, #tpu.memory_space<vmem>>, vector<16x128xf32>,
    return
  }
  func.func @transform_0(%arg0: i32) -> (i32, i32) {
    %c0_i32 = arith.constant 0 : i32
    %c0_i32_0 = arith.constant 0 : i32
    return %arg0, %c0_i32 : i32, i32
  }
  func.func @transform_1(%arg0: i32) -> (i32, i32) {
    %c0_i32 = arith.constant 0 : i32
    %c0_i32_0 = arith.constant 0 : i32
    return %arg0, %c0_i32 : i32, i32
  }
}

</mosaic_0001>

<bundles_post_ra>
// kernel: tpu_custom_call.1
= control target key start
LH: loop header
LB: loop body
LE: loop exit
PB: predicated region body
PF: predicated region fallthrough
CT: control target
= control target key end

     0   :  { %6 = vsyncpa [#allocation3], 0  ;;  %s166_s0 = inlined_call_operand.hbm [shape: f32[16,128], index: 0, kind: input, shape index: {}]   ;;  %s167_s1 = inlined_call_operand.hbm [shape: f32[16,128], index: 1, kind: output, shape index: {}]  }
   0x1   :  { %7 = vsyncpa [#allocation4], 0  ;;  %s122_s6 = smov [#allocation2]   ;;  %s74_s10 = scalar_lea.hbm %s166_s0, 256 }
   0x2   :  { %s13_s7 = sshll.u32 %s122_s6, 4  ;;  %p75_p0 = scmp.ne.s32.totalorder %s166_s0, %s74_s10  ;;  %s14_s7 = int_to_ptr.vmem [resolvable:$true] %s13_s7 }
   0x3   :  { %p78_p1 = scmp.lt.u32.totalorder %s74_s10, %s166_s0 }
   0x5   :  { %p80_p2 = pnand %p78_p1, %p75_p0 }
   0x7   :  { %83 = shalt.err (!%p80_p2)
}
   0x8   :  { %s84_s15 = scalar_lea.vmem %s14_s7, 256  ;;  %p89_p4 = scmp.lt.s32.totalorder %s14_s7, %s14_s7 }
   0x9   :  { %p85_p3 = scmp.ne.s32.totalorder %s14_s7, %s84_s15  ;;  %p90_p5 = scmp.lt.s32.totalorder %s84_s15, %s84_s15 }
   0xb   :  { %p91_p6 = por %p90_p5, %p89_p4 }
   0xd   :  { %p92_p7 = pnand %p91_p6, %p85_p3 }
   0xf   :  { %95 = shalt.err (!%p92_p7)
}
  0x10   :  { %s123_s16 = smov 128   ;;  %s124_s17 = smov 8  }
  0x11   :  { %19 = dma.hbm_to_vmem [thread:$0]  %s166_s0, 256, %s14_s7, [#allocation3], %s123_s16, %s123_s16, %s124_s17  }
  0x12   :  { %118 = dma.done.wait [#allocation3], 256  }
  0x13   :  { %119 = vsyncadd [#allocation3], 4294967040  ;;  %v23_v0 = vld [vmem:[#allocation2] sm:$0xff]  ;;  %v24_v1 = vld [vmem:[#allocation2 + $0x8] sm:$0xff]  ;;  %s125_s0 = smov [#allocation5]  }
  0x14   :  { %v25_v2 = vmin.f32 %v23_v0, 20.0  ;;  %v26_v3 = vmin.f32 %v24_v1, 20.0  ;;  %s50_s20 = sshll.u32 %s125_s0, 4  ;;  %s51_s20 = int_to_ptr.vmem [resolvable:$true] %s50_s20 }
  0x15   :  { %s96_s21 = scalar_lea.vmem %s51_s20, 256  ;;  %p101_p9 = scmp.lt.s32.totalorder %s51_s20, %s51_s20 }
  0x16   :  { %v27_v4 = vmul.f32 1.442695, %v25_v2  ;;  %v29_v5 = vmul.f32 1.442695, %v26_v3  ;;  %p97_p8 = scmp.ne.s32.totalorder %s51_s20, %s96_s21  ;;  %p102_p10 = scmp.lt.s32.totalorder %s96_s21, %s96_s21 }
  0x18   :  { %66 = vpow2.f32 %v27_v4  ;;  %p103_p11 = por %p102_p10, %p101_p9 }
  0x19   :  { %68 = vpow2.f32 %v29_v5 }
  0x1a   :  { %p104_p12 = pnand %p103_p11, %p97_p8 }
  0x22   :  { %v67_v6 = vpop.eup %66 }
  0x23   :  { %v69_v7 = vpop.eup %68  ;;  %v31_v8 = vadd.f32 2.0, %v67_v6 }
  0x24   :  { %v32_v9 = vadd.f32 2.0, %v69_v7 }
  0x25   :  { %v33_v10 = vmul.f32 %v67_v6, %v31_v8 }
  0x26   :  { %v34_v11 = vmul.f32 %v69_v7, %v32_v9 }
  0x27   :  { %v35_v12 = vadd.f32 2.0, %v33_v10 }
  0x28   :  { %v36_v13 = vadd.f32 2.0, %v34_v11 }
  0x29   :  { %70 = vrcp.f32 %v35_v12 }
  0x2a   :  { %72 = vrcp.f32 %v36_v13 }
  0x33   :  { %v71_v14 = vpop.eup %70 }
  0x34   :  { %v73_v15 = vpop.eup %72  ;;  %v39_v16 = vmul.f32 %v71_v14, %v33_v10 }
  0x35   :  { %v40_v17 = vmul.f32 %v73_v15, %v34_v11 }
  0x36   :  { %v41_v18 = vmul.f32 %v39_v16, %v23_v0 }
  0x37   :  { %v42_v19 = vmul.f32 %v40_v17, %v24_v1 }
  0x38   :  { %43 = vst [vmem:[#allocation5] sm:$0xff] %v41_v18 }
  0x39   :  { %44 = vst [vmem:[#allocation5 + $0x8] sm:$0xff] %v42_v19 }
  0x3a   :  { %107 = shalt.err (!%p104_p12)
}
  0x3b   :  { %s108_s24 = scalar_lea.hbm %s167_s1, 256 }
  0x3c   :  { %p109_p13 = scmp.ne.s32.totalorder %s167_s1, %s108_s24  ;;  %p112_p0 = scmp.lt.u32.totalorder %s108_s24, %s167_s1 }
  0x3e   :  { %p114_p1 = pnand %p112_p0, %p109_p13 }
  0x40   :  { %117 = shalt.err (!%p114_p1)
}
  0x41   :  { %56 = dma.vmem_to_hbm [thread:$0]  %s51_s20, 256, %s167_s1, [#allocation4], %s123_s16, %s123_s16, %s124_s17  }
  0x42   :  { %120 = dma.done.wait [#allocation4], 256  }
  0x43   :  { %121 = vsyncadd [#allocation4], 4294967040 }
  0x44   :  { %60 = vsyncpa [#allocation3], 1 }
  0x45   :  { %61 = vsyncpa [#allocation4], 1 }

</bundles_post_ra>
